<compile_context>
chip_gen: v7x
topology: tpu7x:2x2x1
jax: 0.10.0
libtpu: 0.0.40
codegen_flags: <defaults>
</compile_context>

<pallas_src>
import functools

import jax
import jax.numpy as jnp
from jax.experimental import pallas as pl
from jax.experimental.pallas import tpu as pltpu


_EPS_SINKHORN = 0.05
_N_ITERS = 3
_TEMPERATURE = 0.1
_NORM_EPS = 1e-12  # torch.nn.functional.normalize default eps


def _is_v5e_like():
    try:
        kind = jax.devices()[0].device_kind.lower()
        return ("v5e" in kind) or ("v5 lite" in kind) or ("v5lite" in kind)
    except Exception:
        return False


def _swav_branch_kernel(x_ref, z_ref, lp_ref, *, use_mxu_rowsum, use_mxu_colsum):
    """One branch: l2-normalize -> sinkhorn -> z = q/T and log_softmax(z)."""
    x = x_ref[0].astype(jnp.float32)          # (B, D), lane-dense
    B, D = x.shape

    # Hoisted MXU matvec operands (JAX does not CSE broadcast_in_dim).
    ones_d = jnp.ones((D, 1), jnp.float32) if use_mxu_rowsum else None
    ones_b = jnp.ones((1, B), jnp.float32) if use_mxu_colsum else None

    def row_sum(v):                            # lane-direction (axis=1) -> (B, 1)
        if use_mxu_rowsum:
            return jnp.dot(v, ones_d, preferred_element_type=jnp.float32)
        return jnp.sum(v, axis=1, keepdims=True)

    def col_sum(v):                            # sublane-direction (axis=0) -> (1, D)
        if use_mxu_colsum:
            return jnp.dot(ones_b, v, preferred_element_type=jnp.float32)
        return jnp.sum(v, axis=0, keepdims=True)

    # l2-normalize fused with the sinkhorn 1/eps scale:
    #   exp(normalize(x)/eps) == exp(x * rsqrt(max(|x|^2, eps_n^2)) * (1/eps))
    sumsq = row_sum(x * x)
    scale = jax.lax.rsqrt(jnp.maximum(sumsq, _NORM_EPS * _NORM_EPS)) * (1.0 / _EPS_SINKHORN)
    qt = jnp.exp(x * scale)                    # QT = Q.T, shape (B, D)

    # Sinkhorn on QT (reference works on Q = (D, B); axes swapped here).
    # Global `Q /= sum(Q)` dropped: the first row scaling cancels any global
    # scale.  r = ones(D)/D (Q rows -> QT cols), c = ones(B)/(-B) (Q cols ->
    # QT rows).
    r = 1.0 / D
    c = -1.0 / B
    inv_t = 1.0 / _TEMPERATURE
    for it in range(_N_ITERS):                 # short fixed trip count: keep unrolled
        u = col_sum(qt)                        # == sum(Q, dim=1), (1, D)
        qt = qt * (r * pl.reciprocal(u, approx=True))
        s0 = row_sum(qt)                       # == sum(Q, dim=0), (B, 1)
        if it + 1 < _N_ITERS:
            qt = qt * (c * pl.reciprocal(s0, approx=True))
        else:
            # Fold: (* c/s0) then the final (/ c, rows sum exactly to c) then
            # the softmax temperature (* 1/T) == one exact (B,1) divide.
            qt = qt * (inv_t / s0)
    z = qt                                     # z = q / T; q rows sum to 1, q in (0,1)

    # log_softmax(z, dim=1) without max-subtraction: z in (0, 1/T], no overflow.
    lse = jnp.log(row_sum(jnp.exp(z)))
    lp = z - lse

    z_ref[0] = z
    lp_ref[0] = lp


def swav_loss(t_vec, f_vec):
    assert t_vec.shape == f_vec.shape and t_vec.ndim == 2
    B, D = t_vec.shape

    # Stack the two branches on a leading axis so the grid can pipeline /
    # parallelize over them.
    x = jnp.stack([t_vec, f_vec], axis=0)      # (2, B, D)
    itemsize = jnp.dtype(x.dtype).itemsize

    is_v5e = _is_v5e_like()
    use_mxu_rowsum = (D >= 512) and not is_v5e
    use_mxu_colsum = (B >= 256) and not is_v5e

    kernel = functools.partial(
        _swav_branch_kernel,
        use_mxu_rowsum=use_mxu_rowsum,
        use_mxu_colsum=use_mxu_colsum,
    )

    # VMEM budget per core: 2x-buffered input block + 2x-buffered f32 output
    # blocks (z, lp) + ~6 live f32 (B, D) temporaries + 2 MiB headroom.
    # Cap at 75% of physical VMEM (v7x = 64 MiB) so the compiler keeps scratch
    # headroom; floor at 16 MiB (a limit, not an allocation).
    need = (2 * B * D * itemsize) + (2 * 2 * B * D * 4) + (6 * B * D * 4) + (2 << 20)
    try:
        vmem_cap = int(pltpu.get_tpu_info().vmem_capacity_bytes)
    except Exception:
        vmem_cap = 64 << 20
    vmem_limit = int(min(max(need, 16 << 20), int(vmem_cap * 0.75)))

    z, lp = pl.pallas_call(
        kernel,
        out_shape=(
            jax.ShapeDtypeStruct((2, B, D), jnp.float32),   # z  = q / T
            jax.ShapeDtypeStruct((2, B, D), jnp.float32),   # log_softmax(z, dim=1)
        ),
        grid_spec=pltpu.PrefetchScalarGridSpec(
            num_scalar_prefetch=0,
            grid=(2,),
            in_specs=[pl.BlockSpec((1, B, D), lambda b: (b, 0, 0))],
            out_specs=[
                pl.BlockSpec((1, B, D), lambda b: (b, 0, 0)),
                pl.BlockSpec((1, B, D), lambda b: (b, 0, 0)),
            ],
        ),
        compiler_params=pltpu.CompilerParams(
            dimension_semantics=("parallel",),
            vmem_limit_bytes=vmem_limit,
        ),
        cost_estimate=pl.CostEstimate(
            flops=int(40 * B * D),
            transcendentals=int(4 * B * D + 16 * B),
            bytes_accessed=int(2 * B * D * itemsize + 4 * B * D * 4),
        ),
    )(x)

    # Cross-branch combine.  Since z = q/T (T = 0.1):
    #   -20 * mean(q_t*log(p_f) + q_f*log(p_t)) == -2 * mean(z_t*lp_f + z_f*lp_t)
    total = jnp.sum(z[0] * lp[1] + z[1] * lp[0])
    return (-2.0 / (B * D)) * total


def _swav_loss_ref(t_vec, f_vec):
    """Pure-JAX faithful translation of the PyTorch module (for validation)."""
    t_vec = t_vec.astype(jnp.float32)
    f_vec = f_vec.astype(jnp.float32)

    def normalize(x):
        n = jnp.sqrt(jnp.sum(x * x, axis=1, keepdims=True))
        return x / jnp.maximum(n, _NORM_EPS)

    def sinkhorn(scores):
        Q = jnp.exp(scores / _EPS_SINKHORN).T          # (D, B)
        Q = Q / jnp.sum(Q)
        D_, B_ = Q.shape
        r = jnp.ones((D_,), jnp.float32) / D_
        c = jnp.ones((B_,), jnp.float32) / (-B_)
        curr_sum = jnp.sum(Q, axis=1)
        for _ in range(_N_ITERS):
            u = curr_sum
            Q = Q * (r / u)[:, None]
            Q = Q * (c / jnp.sum(Q, axis=0))[None, :]
            curr_sum = jnp.sum(Q, axis=1)
        return (Q / jnp.sum(Q, axis=0, keepdims=True)).T

    q_t = sinkhorn(normalize(t_vec))
    q_f = sinkhorn(normalize(f_vec))
    p_t = jax.nn.softmax(q_t / _TEMPERATURE, axis=1)
    p_f = jax.nn.softmax(q_f / _TEMPERATURE, axis=1)
    return -20.0 * jnp.mean(q_t * jnp.log(p_f) + q_f * jnp.log(p_t))


if __name__ == "__main__":
    key = jax.random.PRNGKey(0)

    def check(B, D, dtype, rtol):
        k1, k2 = jax.random.split(jax.random.fold_in(key, 131 * B + D))
        t = jax.random.normal(k1, (B, D), dtype=jnp.float32).astype(dtype)
        f = jax.random.normal(k2, (B, D), dtype=jnp.float32).astype(dtype)
        loss = jax.block_until_ready(swav_loss(t, f))
        ref = jax.block_until_ready(_swav_loss_ref(t, f))
        assert loss.shape == () and bool(jnp.isfinite(loss)), (B, D, dtype, loss)
        # Algebraic reassociation + approx reciprocals => tolerance, not bitwise.
        assert jnp.allclose(loss, ref, rtol=rtol, atol=1e-5), (B, D, dtype, loss, ref)

    check(8, 128, jnp.float32, 2e-2)      # base case
    check(16, 512, jnp.float32, 2e-2)     # exercises the MXU row-sum path (D >= 512)
    check(8, 128, jnp.bfloat16, 2e-2)     # bf16 inputs, upcast inside the kernel
    print("KERNEL_OK")
</pallas_src>

<mosaic_0001>
module attributes {stable_mosaic.version = 11 : i64} {
  func.func @_swav_branch_kernel(%arg0: i32, %arg1: memref<1x8x128xf32, #tpu.memory_space<vmem>>, %arg2: memref<1x8x128xf32, #tpu.memory_space<vmem>>, %arg3: memref<1x8x128xf32, #tpu.memory_space<vmem>>) attributes {dimension_semantics = [#tpu.dimension_semantics<parallel>], iteration_bounds = array<i64: 2>, scalar_prefetch = 0 : i64, scratch_operands = 0 : i64, tpu.core_type = #tpu.core_type<tc>, window_params = [{transform_indices = @transform_0, window_bounds = array<i64: 1, 8, 128>}, {transform_indices = @transform_1, window_bounds = array<i64: 1, 8, 128>}, {transform_indices = @transform_2, window_bounds = array<i64: 1, 8, 128>}]} {
    %c0 = arith.constant 0 : index
    %c0_0 = arith.constant 0 : index
    %c0_1 = arith.constant 0 : index
    %0 = vector.load %arg1[%c0, %c0_0, %c0_1] : memref<1x8x128xf32, #tpu.memory_space<vmem>>, vector<1x8x128xf32>
    %1 = vector.shape_cast %0 : vector<1x8x128xf32> to vector<8x128xf32>
    %2 = arith.mulf %1, %1 : vector<8x128xf32>
    %cst = arith.constant dense<0.000000e+00> : vector<8xf32>
    %3 = vector.multi_reduction <add>, %2, %cst [1] : vector<8x128xf32> to vector<8xf32>
    %4 = vector.shape_cast %3 : vector<8xf32> to vector<8x1xf32>
    %cst_2 = arith.constant 1.000000e-24 : f32
    %5 = vector.broadcast %cst_2 : f32 to vector<8x1xf32>
    %6 = arith.maximumf %4, %5 : vector<8x1xf32>
    %7 = math.rsqrt %6 : vector<8x1xf32>
    %cst_3 = arith.constant 2.000000e+01 : f32
    %8 = vector.broadcast %cst_3 : f32 to vector<8x1xf32>
    %9 = arith.mulf %7, %8 : vector<8x1xf32>
    %10 = vector.broadcast %9 : vector<8x1xf32> to vector<8x128xf32>
    %11 = arith.mulf %1, %10 : vector<8x128xf32>
    %12 = math.exp %11 : vector<8x128xf32>
    %cst_4 = arith.constant dense<0.000000e+00> : vector<128xf32>
    %13 = vector.multi_reduction <add>, %12, %cst_4 [0] : vector<8x128xf32> to vector<128xf32>
    %14 = vector.shape_cast %13 : vector<128xf32> to vector<1x128xf32>
    %15 = tpu.reciprocal %14 {approx = true} : vector<1x128xf32> -> vector<1x128xf32>
    %cst_5 = arith.constant 7.812500e-03 : f32
    %16 = vector.broadcast %cst_5 : f32 to vector<1x128xf32>
    %17 = arith.mulf %16, %15 : vector<1x128xf32>
    %18 = vector.broadcast %17 : vector<1x128xf32> to vector<8x128xf32>
    %19 = arith.mulf %12, %18 : vector<8x128xf32>
    %cst_6 = arith.constant dense<0.000000e+00> : vector<8xf32>
    %20 = vector.multi_reduction <add>, %19, %cst_6 [1] : vector<8x128xf32> to vector<8xf32>
    %21 = vector.shape_cast %20 : vector<8xf32> to vector<8x1xf32>
    %22 = tpu.reciprocal %21 {approx = true} : vector<8x1xf32> -> vector<8x1xf32>
    %cst_7 = arith.constant -1.250000e-01 : f32
    %23 = vector.broadcast %cst_7 : f32 to vector<8x1xf32>
    %24 = arith.mulf %23, %22 : vector<8x1xf32>
    %25 = vector.broadcast %24 : vector<8x1xf32> to vector<8x128xf32>
    %26 = arith.mulf %19, %25 : vector<8x128xf32>
    %cst_8 = arith.constant dense<0.000000e+00> : vector<128xf32>
    %27 = vector.multi_reduction <add>, %26, %cst_8 [0] : vector<8x128xf32> to vector<128xf32>
    %28 = vector.shape_cast %27 : vector<128xf32> to vector<1x128xf32>
    %29 = tpu.reciprocal %28 {approx = true} : vector<1x128xf32> -> vector<1x128xf32>
    %cst_9 = arith.constant 7.812500e-03 : f32
    %30 = vector.broadcast %cst_9 : f32 to vector<1x128xf32>
    %31 = arith.mulf %30, %29 : vector<1x128xf32>
    %32 = vector.broadcast %31 : vector<1x128xf32> to vector<8x128xf32>
    %33 = arith.mulf %26, %32 : vector<8x128xf32>
    %cst_10 = arith.constant dense<0.000000e+00> : vector<8xf32>
    %34 = vector.multi_reduction <add>, %33, %cst_10 [1] : vector<8x128xf32> to vector<8xf32>
    %35 = vector.shape_cast %34 : vector<8xf32> to vector<8x1xf32>
    %36 = tpu.reciprocal %35 {approx = true} : vector<8x1xf32> -> vector<8x1xf32>
    %cst_11 = arith.constant -1.250000e-01 : f32
    %37 = vector.broadcast %cst_11 : f32 to vector<8x1xf32>
    %38 = arith.mulf %37, %36 : vector<8x1xf32>
    %39 = vector.broadcast %38 : vector<8x1xf32> to vector<8x128xf32>
    %40 = arith.mulf %33, %39 : vector<8x128xf32>
    %cst_12 = arith.constant dense<0.000000e+00> : vector<128xf32>
    %41 = vector.multi_reduction <add>, %40, %cst_12 [0] : vector<8x128xf32> to vector<128xf32>
    %42 = vector.shape_cast %41 : vector<128xf32> to vector<1x128xf32>
    %43 = tpu.reciprocal %42 {approx = true} : vector<1x128xf32> -> vector<1x128xf32>
    %cst_13 = arith.constant 7.812500e-03 : f32
    %44 = vector.broadcast %cst_13 : f32 to vector<1x128xf32>
    %45 = arith.mulf %44, %43 : vector<1x128xf32>
    %46 = vector.broadcast %45 : vector<1x128xf32> to vector<8x128xf32>
    %47 = arith.mulf %40, %46 : vector<8x128xf32>
    %cst_14 = arith.constant dense<0.000000e+00> : vector<8xf32>
    %48 = vector.multi_reduction <add>, %47, %cst_14 [1] : vector<8x128xf32> to vector<8xf32>
    %49 = vector.shape_cast %48 : vector<8xf32> to vector<8x1xf32>
    %cst_15 = arith.constant 1.000000e+01 : f32
    %50 = vector.broadcast %cst_15 : f32 to vector<8x1xf32>
    %51 = arith.divf %50, %49 : vector<8x1xf32>
    %52 = vector.broadcast %51 : vector<8x1xf32> to vector<8x128xf32>
    %53 = arith.mulf %47, %52 : vector<8x128xf32>
    %54 = math.exp %53 : vector<8x128xf32>
    %cst_16 = arith.constant dense<0.000000e+00> : vector<8xf32>
    %55 = vector.multi_reduction <add>, %54, %cst_16 [1] : vector<8x128xf32> to vector<8xf32>
    %56 = vector.shape_cast %55 : vector<8xf32> to vector<8x1xf32>
    %57 = math.log %56 : vector<8x1xf32>
    %58 = vector.broadcast %57 : vector<8x1xf32> to vector<8x128xf32>
    %59 = arith.subf %53, %58 : vector<8x128xf32>
    %c0_17 = arith.constant 0 : index
    %c0_18 = arith.constant 0 : index
    %c0_19 = arith.constant 0 : index
    %60 = vector.load %arg2[%c0_17, %c0_18, %c0_19] : memref<1x8x128xf32, #tpu.memory_space<vmem>>, vector<1x8x128xf32>
    %61 = vector.shape_cast %60 : vector<1x8x128xf32> to vector<8x128xf32>
    %62 = vector.shape_cast %53 : vector<8x128xf32> to vector<1x8x128xf32>
    tpu.vector_store %arg2[%c0_17, %c0_18, %c0_19], %62 {strides = array<i32>} : memref<1x8x128xf32, #tpu.memory_space<vmem>>, vector<1x8x128xf32>,
    %c0_20 = arith.constant 0 : index
    %c0_21 = arith.constant 0 : index
    %c0_22 = arith.constant 0 : index
    %63 = vector.load %arg3[%c0_20, %c0_21, %c0_22] : memref<1x8x128xf32, #tpu.memory_space<vmem>>, vector<1x8x128xf32>
    %64 = vector.shape_cast %63 : vector<1x8x128xf32> to vector<8x128xf32>
    %65 = vector.shape_cast %59 : vector<8x128xf32> to vector<1x8x128xf32>
    tpu.vector_store %arg3[%c0_20, %c0_21, %c0_22], %65 {strides = array<i32>} : memref<1x8x128xf32, #tpu.memory_space<vmem>>, vector<1x8x128xf32>,
    return
  }
  func.func @transform_0(%arg0: i32) -> (i32, i32, i32) {
    %c0_i32 = arith.constant 0 : i32
    %c0_i32_0 = arith.constant 0 : i32
    %c0_i32_1 = arith.constant 0 : i32
    return %arg0, %c0_i32, %c0_i32_0 : i32, i32, i32
  }
  func.func @transform_1(%arg0: i32) -> (i32, i32, i32) {
    %c0_i32 = arith.constant 0 : i32
    %c0_i32_0 = arith.constant 0 : i32
    %c0_i32_1 = arith.constant 0 : i32
    return %arg0, %c0_i32, %c0_i32_0 : i32, i32, i32
  }
  func.func @transform_2(%arg0: i32) -> (i32, i32, i32) {
    %c0_i32 = arith.constant 0 : i32
    %c0_i32_0 = arith.constant 0 : i32
    %c0_i32_1 = arith.constant 0 : i32
    return %arg0, %c0_i32, %c0_i32_0 : i32, i32, i32
  }
}

</mosaic_0001>

<bundles_post_ra>
// kernel: tpu_custom_call.1
= control target key start
LH: loop header
LB: loop body
LE: loop exit
PB: predicated region body
PF: predicated region fallthrough
CT: control target
= control target key end

     0   :  { %8 = vsyncpa [#allocation3], 0  ;;  %s792_s0 = inlined_call_operand.hbm [shape: f32[2,8,128], index: 0, kind: input, shape index: {}]   ;;  %s793_s1 = inlined_call_operand.hbm [shape: f32[2,8,128], index: 1, kind: output, shape index: {0}]   ;;  %s794_s2 = inlined_call_operand.hbm [shape: f32[2,8,128], index: 2, kind: output, shape index: {1}]  }
   0x1   :  { %10 = vsyncpa [#allocation3 + $0x1], 0 }
   0x2   :  { %11 = vsyncpa [#allocation4], 0 }
   0x3   :  { %13 = vsyncpa [#allocation4 + $0x1], 0 }
   0x4   :  { %14 = vsyncpa [#allocation7], 0 }
   0x5   :  { %16 = vsyncpa [#allocation7 + $0x1], 0  ;;  %s599_s9 = smov 0   ;;  %s601_s10 = smov 0  }
   0x6   :  { %s603_s11 = smov 0   ;;  %s605_s12 = smov 0  }
   0x7 LB: > { %s620_s13 = sadd.s32 4294967295, %s579_s12   ;;  %s365_s14 = sadd.s32 4294967294, %s579_s12   ;;  %s579_s12 = sphi %s605_s12, %s809_s12   ;;  %s575_s11 = sphi %s603_s11, %s808_s11   ;;  %s571_s10 = sphi %s601_s10, %s807_s10   ;;  %s567_s9 = sphi %s599_s9, %s806_s9  }
   0x8   : > { %s624_s15 = sadd.s32 1, %s579_s12   ;;  %s29_s16 = sadd.s32 1, %s575_s11 }
   0x9   : > { %s26_s17 = ssub.s32 %s579_s12, %s624_s15  ;;  %p36_p0 = scmp.ne.s32.totalorder %s575_s11, %s571_s10 }
   0xa   : > { %p27_p1 = scmp.eq.s32.totalorder %s26_s17, 0  ;;  %p37_p2 = scmp.eq.s32.totalorder %s579_s12, 0 }
   0xb   : > { %p42_p3 = scmp.ne.s32.totalorder %s571_s10, %s567_s9  ;;  %p43_p4 = scmp.eq.s32.totalorder %s620_s13, 0 }
   0xc   : > { %s636_s18 = scalar_select %p27_p1, %s575_s11, %s29_s16  }
   0xd   : > { %p638_p5 = por %p37_p2, %p36_p0  ;;  %p642_p6 = por %p43_p4, %p42_p3 }
   0xe   : > { %p66_p7 = scmp.eq.s32.totalorder %s620_s13, 1  ;;  %p72_p8 = scmp.eq.s32.totalorder %s365_s14, 1 }
   0xf   : > { %p397_p10 = scmp.lt.s32.totalorder %s579_s12, 2  ;;  %s118_s23 = sand.u32 1, %s575_s11  }
  0x10   : > { %p649_p11 = por %p66_p7, %p36_p0  ;;  %p653_p12 = por %p72_p8, %p42_p3 }
  0x11   : > { %s369_s24 = sshll.u32 %s579_s12, 7  ;;  %s368_s25 = sshll.u32 %s118_s23, 3 }
  0x12   : > { %s798_s21 = scalar_select %p649_p11, 1, 0 }
  0x13   : > { %s799_s22 = scalar_select %p653_p12, 1, 0 }
  0x14   : > { %s662_s28 = scalar_lea.hbm %s792_s0, %s369_s24  ;;  %s122_s29 = scalar_lea.vmem [#allocation2], %s368_s25 }
  0x15   : > { %s129_s30 = sshll.u32 %s122_s29, 4  ;;  %p666_p13 = pnand %p397_p10, %p638_p5  ;;  %s670_s30 = int_to_ptr.vmem [resolvable:$true] %s129_s30 }
  0x16   : > { %s119_s4 = scalar_lea.sflag [#allocation3], %s118_s23  ;;  %s451_s5 = scalar_lea.hbm %s662_s28, 128 }
  0x17   : > { %p452_p2 = scmp.ne.s32.totalorder %s662_s28, %s451_s5  ;;  %p453_p3 = pneg %p666_p13 }
  0x18   : > { %s456_s8 = scalar_lea.hbm %s792_s0, 256  ;;  %p457_p5 = scmp.lt.u32.totalorder %s662_s28, %s792_s0 }
  0x19   : > { %p454_p4 = pnand %p453_p3, %p452_p2  ;;  %p458_p8 = scmp.lt.u32.totalorder %s456_s8, %s451_s5 }
  0x1a   : > { %p460_p9 = scmp.lt.u32.totalorder %s451_s5, %s662_s28 }
  0x1b   : > { %p455_p7 = pneg %p454_p4  ;;  %p459_p10 = por %p458_p8, %p457_p5 }
  0x1d   : > { %p461_p0 = por %p460_p9, %p459_p10 }
  0x1f   : > { %p462_p1 = pnand %p461_p0, %p455_p7 }
  0x21   : > { %465 = shalt.err (!%p462_p1)
}
  0x22   : > { %s466_s17 = scalar_lea.vmem %s670_s30, 128  ;;  %s581_s19 = smov [#allocation2]  }
  0x23   : > { %p467_p2 = scmp.ne.s32.totalorder %s670_s30, %s466_s17  ;;  %s471_s23 = sshll.u32 %s581_s19, 4  ;;  %s472_s23 = int_to_ptr.vmem [resolvable:$false] %s471_s23 }
  0x24   : > { %s473_s24 = scalar_lea.vmem %s472_s23, 256  ;;  %p474_p11 = scmp.lt.s32.totalorder %s670_s30, %s472_s23 }
  0x25   : > { %p469_p4 = pnand %p467_p2, %p453_p3  ;;  %p475_p5 = scmp.lt.s32.totalorder %s473_s24, %s466_s17 }
  0x27   : > { %p470_p12 = pneg %p469_p4  ;;  %p476_p8 = por %p475_p5, %p474_p11 }
  0x29   : > { %p477_p9 = pnand %p476_p8, %p470_p12 }
  0x2b   : > { %480 = shalt.err (!%p477_p9)
}
  0x2c   : > { %389 = dma.hbm_to_vmem [thread:$0]  (!%p666_p13), %s662_s28, 128, %s670_s30, %s119_s4  }
  0x2d   : > { %p801_p0 = scmp.lt.s32.totalorder %s579_s12, 3  ;;  %p802_p1 = scmp.ge.s32.totalorder %s579_s12, 1 }
  0x2f   : > { %p135_p3 = pnand %p802_p1, %p801_p0 }
  0x30   : > { %s704_s25 = sand.u32 (!%p135_p3), 1, %s571_s10  }
  0x31   : > { %138 = sbr.rel (%p135_p3) target bundleno = 968 (0x3c8), region = 24  ;;  %s707_s26 = sshll.u32 (!%p135_p3), %s704_s25, 3 }
  0x32   : > { %s141_s27 = scalar_lea.sflag (!%p135_p3), [#allocation3], %s704_s25  ;;  %s144_s29 = scalar_lea.vmem (!%p135_p3), [#allocation2], %s707_s26 }
  0x38   : > { %554 = dma.done.wait (%p642_p6), %s141_s27, 128  }
  0x39   : > { %556 = vsyncadd (%p642_p6), %s141_s27, 4294967168  ;;  %v170_v0 = vld [vmem:[%s144_s29] sm:$0xff]  ;;  %s162_s20 = scalar_lea.vmem [#allocation5], %s707_s26  ;;  %s376_s28 = sshll.u32 %s620_s13, 7 }
  0x3a   : > { %v171_v1 = vmul.f32 %v170_v0, %v170_v0  ;;  %s722_s4 = scalar_lea.hbm %s793_s1, %s376_s28  ;;  %s250_s5 = sshll.u32 %s162_s20, 4  ;;  %s251_s5 = int_to_ptr.vmem [resolvable:$true] %s250_s5 }
  0x3b   : > { %s232_s6 = scalar_lea.sflag [#allocation4], %s704_s25  ;;  %s481_s7 = scalar_lea.vmem %s251_s5, 128 }
  0x3c   : > { %172 = vadd.xlane.f32.xlu0 %v171_v1  ;;  %p482_p6 = scmp.ne.s32.totalorder %s251_s5, %s481_s7  ;;  %p803_p11 = scmp.ne.s32.totalorder %s798_s21, 0 }
  0x3d   : > { %s582_s8 = smov [#allocation5]  }
  0x3e   : > { %p483_p12 = pnand %p482_p6, %p803_p11  ;;  %s485_s14 = sshll.u32 %s582_s8, 4  ;;  %s486_s14 = int_to_ptr.vmem [resolvable:$false] %s485_s14 }
  0x3f   : > { %s487_s16 = scalar_lea.vmem %s486_s14, 256  ;;  %p488_p7 = scmp.lt.s32.totalorder %s251_s5, %s486_s14 }
  0x40   : > { %p484_p13 = pneg %p483_p12  ;;  %p489_p10 = scmp.lt.s32.totalorder %s487_s16, %s481_s7 }
  0x42   : > { %p490_p2 = por %p489_p10, %p488_p7 }
  0x44   : > { %p491_p4 = pnand %p490_p2, %p484_p13 }
  0xc9   : > { %v173_v2 = vpop.xlane.xlu0 %172 }
  0xca   : > { %v174_v3 = vmax.f32 %v173_v2, 1e-24 }
  0xcc   : > { %431 = vrsqrt.f32 %v174_v3 }
  0xd6   : > { %v432_v4 = vpop.eup %431 }
  0xd7   : > { %v176_v5 = vmul.f32 20.0, %v432_v4 }
  0xd9   : > { %v177_v6 = vmul.f32 %v176_v5, %v170_v0 }
  0xdb   : > { %v178_v7 = vmul.f32 1.442695, %v177_v6 }
  0xdd   : > { %433 = vpow2.f32 %v178_v7 }
  0xe7   : > { %v434_v8 = vpop.eup %433 }
  0xe8   : > { %v180_v9 = vrot.slane %v434_v8, 4 }
  0xea   : > { %v181_v10 = vadd.f32 %v434_v8, %v180_v9 }
  0xec   : > { %v182_v11 = vrot.slane %v181_v10, 2 }
  0xee   : > { %v183_v12 = vadd.f32 %v182_v11, %v181_v10 }
  0xf0   : > { %v184_v13 = vrot.slane %v183_v12, 1 }
  0xf2   : > { %v185_v14 = vadd.f32 %v184_v13, %v183_v12 }
  0xf4   : > { %435 = vrcp.f32 %v185_v14 }
  0xfe   : > { %v436_v15 = vpop.eup %435 }
  0xff   : > { %v187_v16 = vmul.f32 0.0078125, %v436_v15 }
 0x101   : > { %v188_v17 = vmul.f32 %v434_v8, %v187_v16 }
 0x103   : > { %189 = vadd.xlane.f32.xlu0 %v188_v17 }
 0x190   : > { %v190_v18 = vpop.xlane.xlu0 %189 }
 0x191   : > { %437 = vrcp.f32 %v190_v18 }
 0x19b   : > { %v438_v19 = vpop.eup %437 }
 0x19c   : > { %v192_v20 = vmul.f32 -0.125, %v438_v19 }
 0x19e   : > { %v193_v21 = vmul.f32 %v192_v20, %v188_v17 }
 0x1a0   : > { %v194_v22 = vrot.slane %v193_v21, 4 }
 0x1a2   : > { %v195_v23 = vadd.f32 %v194_v22, %v193_v21 }
 0x1a4   : > { %v196_v24 = vrot.slane %v195_v23, 2 }
 0x1a6   : > { %v197_v25 = vadd.f32 %v196_v24, %v195_v23 }
 0x1a8   : > { %v198_v26 = vrot.slane %v197_v25, 1 }
 0x1aa   : > { %v199_v27 = vadd.f32 %v198_v26, %v197_v25 }
 0x1ac   : > { %439 = vrcp.f32 %v199_v27 }
 0x1b6   : > { %v440_v28 = vpop.eup %439 }
 0x1b7   : > { %v201_v29 = vmul.f32 0.0078125, %v440_v28 }
 0x1b9   : > { %v202_v30 = vmul.f32 %v201_v29, %v193_v21 }
 0x1bb   : > { %203 = vadd.xlane.f32.xlu1 %v202_v30 }
 0x248   : > { %v204_v31 = vpop.xlane.xlu1 %203 }
 0x249   : > { %441 = vrcp.f32 %v204_v31 }
 0x253   : > { %v442_v32 = vpop.eup %441 }
 0x254   : > { %v206_v33 = vmul.f32 -0.125, %v442_v32 }
 0x256   : > { %v207_v34 = vmul.f32 %v206_v33, %v202_v30 }
 0x258   : > { %v208_v35 = vrot.slane %v207_v34, 4 }
 0x25a   : > { %v209_v36 = vadd.f32 %v208_v35, %v207_v34 }
 0x25c   : > { %v210_v37 = vrot.slane %v209_v36, 2 }
 0x25e   : > { %v211_v38 = vadd.f32 %v210_v37, %v209_v36 }
 0x260   : > { %v212_v39 = vrot.slane %v211_v38, 1 }
 0x262   : > { %v213_v40 = vadd.f32 %v212_v39, %v211_v38 }
 0x264   : > { %443 = vrcp.f32 %v213_v40 }
 0x26e   : > { %v444_v41 = vpop.eup %443 }
 0x26f   : > { %v215_v42 = vmul.f32 0.0078125, %v444_v41 }
 0x271   : > { %v216_v43 = vmul.f32 %v215_v42, %v207_v34 }
 0x273   : > { %217 = vadd.xlane.f32.xlu1 %v216_v43 }
 0x300   : > { %v218_v44 = vpop.xlane.xlu1 %217 }
 0x301   : > { %445 = vrcp.f32 %v218_v44 }
 0x30b   : > { %v446_v45 = vpop.eup %445 }
 0x30c   : > { %v220_v46 = vmul.f32 10.0, %v446_v45 }
 0x30e   : > { %v221_v47 = vmul.f32 %v220_v46, %v216_v43 }
 0x310   : > { %v222_v48 = vmul.f32 1.442695, %v221_v47  ;;  %229 = vst [vmem:[%s162_s20] sm:$0xff] %v221_v47 }
 0x312   : > { %447 = vpow2.f32 %v222_v48 }
 0x31c   : > { %v448_v49 = vpop.eup %447 }
 0x31d   : > { %224 = vadd.xlane.f32.xlu0 %v448_v49 }
 0x31e   : > { %494 = shalt.err (!%p491_p4)
}
 0x31f   : > { %s495_s17 = scalar_lea.hbm %s722_s4, 128  ;;  %s499_s24 = scalar_lea.hbm %s793_s1, 256 }
 0x320   : > { %p496_p5 = scmp.ne.s32.totalorder %s722_s4, %s495_s17  ;;  %p500_p0 = scmp.lt.u32.totalorder %s722_s4, %s793_s1 }
 0x321   : > { %p501_p1 = scmp.lt.u32.totalorder %s499_s24, %s495_s17  ;;  %p503_p6 = scmp.lt.u32.totalorder %s495_s17, %s722_s4 }
 0x322   : > { %p497_p8 = pnand %p496_p5, %p803_p11 }
 0x323   : > { %p502_p3 = por %p501_p1, %p500_p0 }
 0x324   : > { %p498_p9 = pneg %p497_p8 }
 0x325   : > { %p504_p12 = por %p503_p6, %p502_p3 }
 0x327   : > { %p505_p13 = pnand %p504_p12, %p498_p9 }
 0x329   : > { %508 = shalt.err (!%p505_p13)
}
 0x32a   : > { %382 = dma.vmem_to_hbm [thread:$0]  (%p803_p11), %s251_s5, 128, %s722_s4, %s232_s6  }
 0x32b   : > { %s169_s20 = scalar_lea.vmem [#allocation6], %s707_s26  ;;  %s748_s8 = scalar_lea.hbm %s794_s2, %s376_s28 }
 0x32c   : > { %s263_s30 = sshll.u32 %s169_s20, 4  ;;  %s237_s4 = scalar_lea.sflag [#allocation7], %s704_s25  ;;  %s750_s30 = int_to_ptr.vmem [resolvable:$true] %s263_s30 }
 0x32d   : > { %s509_s5 = scalar_lea.vmem %s750_s30, 128  ;;  %s583_s26 = smov [#allocation6]  }
 0x32e   : > { %p510_p7 = scmp.ne.s32.totalorder %s750_s30, %s509_s5  ;;  %s513_s6 = sshll.u32 %s583_s26, 4  ;;  %s514_s6 = int_to_ptr.vmem [resolvable:$false] %s513_s6 }
 0x32f   : > { %s515_s13 = scalar_lea.vmem %s514_s6, 256  ;;  %p516_p4 = scmp.lt.s32.totalorder %s750_s30, %s514_s6 }
 0x330   : > { %p511_p10 = pnand %p510_p7, %p803_p11  ;;  %p517_p5 = scmp.lt.s32.totalorder %s515_s13, %s509_s5 }
 0x332   : > { %p512_p2 = pneg %p511_p10  ;;  %p518_p8 = por %p517_p5, %p516_p4 }
 0x334   : > { %p519_p9 = pnand %p518_p8, %p512_p2 }
 0x3aa   : > { %v225_v50 = vpop.xlane.xlu0 %224 }
 0x3ab   : > { %449 = vlog2.f32 %v225_v50 }
 0x3b5   : > { %v450_v51 = vpop.eup %449 }
 0x3b6   : > { %v227_v52 = vmul.f32 0.6931472, %v450_v51 }
 0x3b8   : > { %v228_v53 = vsub.f32 %v221_v47, %v227_v52 }
 0x3ba   : > { %230 = vst [vmem:[%s169_s20] sm:$0xff] %v228_v53 }
 0x3bb   : > { %522 = shalt.err (!%p519_p9)
}
 0x3bc   : > { %s523_s25 = scalar_lea.hbm %s748_s8, 128  ;;  %s527_s16 = scalar_lea.hbm %s794_s2, 256 }
 0x3bd   : > { %p524_p0 = scmp.ne.s32.totalorder %s748_s8, %s523_s25  ;;  %p528_p6 = scmp.lt.u32.totalorder %s748_s8, %s794_s2 }
 0x3be   : > { %p529_p12 = scmp.lt.u32.totalorder %s527_s16, %s523_s25  ;;  %p531_p7 = scmp.lt.u32.totalorder %s523_s25, %s748_s8 }
 0x3bf   : > { %p525_p1 = pnand %p524_p0, %p803_p11 }
 0x3c0   : > { %p530_p13 = por %p529_p12, %p528_p6 }
 0x3c1   : > { %p526_p3 = pneg %p525_p1 }
 0x3c2   : > { %p532_p10 = por %p531_p7, %p530_p13 }
 0x3c4   : > { %p533_p2 = pnand %p532_p10, %p526_p3 }
 0x3c6   : > { %536 = shalt.err (!%p533_p2)
}
 0x3c7   : > { %383 = dma.vmem_to_hbm [thread:$0]  (%p803_p11), %s750_s30, 128, %s748_s8, %s237_s4  }
 0x3c8 PF: > { %s275_s23 = sand.u32 1, %s567_s9   ;;  %p804_p4 = scmp.ne.s32.totalorder %s799_s22, 0 }
 0x3c9   : > { %p805_p5 = scmp.ge.s32.totalorder %s579_s12, 2  ;;  %s276_s24 = scalar_lea.sflag [#allocation4], %s275_s23 }
 0x3cb   : > { %p391_p8 = pnand %p805_p5, %p804_p4 }
 0x3cd   : > { %558 = dma.done.wait (!%p391_p8), %s276_s24, 128  }
 0x3ce   : > { %560 = vsyncadd (!%p391_p8), %s276_s24, 4294967168  ;;  %s285_s27 = scalar_lea.sflag [#allocation7], %s275_s23 }
 0x3cf   : > { %562 = dma.done.wait (!%p391_p8), %s285_s27, 128  }
 0x3d0   : > { %564 = vsyncadd (!%p391_p8), %s285_s27, 4294967168  ;;  %p19_p11 = scmp.ge.s32.totalorder %s624_s15, 4   ;;  %s806_s9 = smov %s571_s10 }
 0x3d1   : > { %s807_s10 = smov %s575_s11  ;;  %s808_s11 = smov %s636_s18 }
 0x3d2   : > { %s809_s12 = smov %s624_s15  ;;  %21 = sbr.rel (!%p19_p11) target bundleno = 7 (0x7), region = 86 }
 0x3d9   :  { %290 = vsyncpa [#allocation3], 1 }
 0x3da   :  { %292 = vsyncpa [#allocation3 + $0x1], 1 }
 0x3db   :  { %293 = vsyncpa [#allocation4], 1 }
 0x3dc   :  { %295 = vsyncpa [#allocation4 + $0x1], 1 }
 0x3dd   :  { %296 = vsyncpa [#allocation7], 1 }
 0x3de   :  { %298 = vsyncpa [#allocation7 + $0x1], 1 }

</bundles_post_ra>
